<compile_context>
chip_gen: v7x
topology: tpu7x:2x2x1
jax: 0.10.0
libtpu: 0.0.40
codegen_flags: <defaults>
</compile_context>

<pallas_src>
import jax
import jax.numpy as jnp
from jax.experimental import pallas as pl
from jax.experimental.pallas import tpu as pltpu

R_MIN = 1.0          # norm-ball safety radius (module has no learnable parameters)

_LANES = 512         # lane-dense slab width (multiple of 128 -> unmasked vld/vst)
_MAX_TILE_R = 2048   # 3 slabs x 2 buffers x 2048 x 512 x 4B = 24 MiB (fits v7x VMEM)
_MIN_STEPS = 4       # keep >=4 grid steps when possible (v7x dual-TC sharding)


def _cbf_kernel(xy_ref, h_ref):
    # xy_ref: (2, TILE_R, 512) stacked x/y planes; h_ref: (TILE_R, 512). Pure VPU work.
    x = xy_ref[0].astype(jnp.float32)
    y = xy_ref[1].astype(jnp.float32)
    h_ref[...] = (x * x + y * y - (R_MIN * R_MIN)).astype(h_ref.dtype)


@jax.jit
def cbf_forward(state):
    """state: [B, A, T, D_states] -> h_vals: [B, A, T-1, 1]."""
    B, A, T, D = state.shape
    Tm1 = T - 1
    M = B * A * Tm1
    dtype = state.dtype
    itemsize = jnp.dtype(dtype).itemsize

    # ---- static tile sizing ----------------------------------------------------
    rows_needed = max(1, pl.cdiv(M, _LANES))
    # sub-32-bit dtypes pack 2-4 rows per sublane: stay on native (8/16/32, 128) tiles
    sub = {4: 8, 2: 16, 1: 32}.get(itemsize, 8)
    tile_r = sub
    while (tile_r * 2 <= _MAX_TILE_R
           and pl.cdiv(rows_needed, tile_r * 2) >= _MIN_STEPS):
        tile_r *= 2
    R = pl.cdiv(rows_needed, tile_r) * tile_r
    Mpad = R * _LANES
    pad = Mpad - M
    grid = (R // tile_r,)

    # explicit double-buffered VMEM budget: input (2 planes) + output slab, x2 buffers
    block_bytes = 3 * tile_r * _LANES * itemsize
    vmem_limit = max(32 << 20, 2 * block_bytes + (4 << 20))

    # ---- single combined pack: slice -> channel-major -> pad -> [2, R, 512] -----
    # Under jit this lowers to one XLA fusion: one read of the consumed state bytes
    # and one HBM write of the stacked slab (no separate split / pad copies).
    pos = state[:, :, 1:, :2]                       # [B, A, T-1, 2]
    xy = jnp.moveaxis(pos, -1, 0).reshape(2, M)     # [2, M]  (x plane, y plane)
    if pad:
        xy = jnp.pad(xy, ((0, 0), (0, pad)))
    xy = xy.reshape(2, R, _LANES)

    h = pl.pallas_call(
        _cbf_kernel,
        out_shape=jax.ShapeDtypeStruct((R, _LANES), dtype),
        grid_spec=pltpu.PrefetchScalarGridSpec(
            num_scalar_prefetch=0,
            grid=grid,
            in_specs=[pl.BlockSpec((2, tile_r, _LANES), lambda i: (0, i, 0))],
            out_specs=pl.BlockSpec((tile_r, _LANES), lambda i: (i, 0)),
        ),
        compiler_params=pltpu.CompilerParams(
            dimension_semantics=("parallel",),      # shards rows across TCs on v7x
            vmem_limit_bytes=vmem_limit,
        ),
    )(xy)

    # Lane-dense slab -> contract layout. The [:M] slice is a no-op when pad == 0.
    return h.reshape(-1)[:M].reshape(B, A, Tm1, 1)


if __name__ == "__main__":
    key = jax.random.PRNGKey(0)
    B, A, T, D = 2, 4, 8, 4                         # small shapes: [B, A, T, D_states]
    state = jax.random.normal(key, (B, A, T, D), dtype=jnp.float32)

    h = cbf_forward(state)
    jax.block_until_ready(h)
    assert h.shape == (B, A, T - 1, 1), h.shape

    # pure-JAX reference (f32)
    ref = jnp.sum(state[:, :, 1:, :2] ** 2, axis=-1, keepdims=True) - R_MIN * R_MIN
    assert jnp.allclose(h, ref, atol=1e-5), float(jnp.max(jnp.abs(h - ref)))

    # bf16 path: f32 compute in-kernel, output cast back to bf16 -> looser tolerance
    state_bf = state.astype(jnp.bfloat16)
    h_bf = cbf_forward(state_bf)
    jax.block_until_ready(h_bf)
    ref_bf = (jnp.sum(state_bf.astype(jnp.float32)[:, :, 1:, :2] ** 2,
                      axis=-1, keepdims=True) - R_MIN * R_MIN)
    assert jnp.allclose(h_bf.astype(jnp.float32), ref_bf, atol=5e-2, rtol=2e-2), \
        float(jnp.max(jnp.abs(h_bf.astype(jnp.float32) - ref_bf)))

    print("KERNEL_OK")
</pallas_src>

<mosaic_0001>
module attributes {stable_mosaic.version = 11 : i64} {
  func.func @_cbf_kernel(%arg0: i32, %arg1: memref<2x8x512xf32, #tpu.memory_space<vmem>>, %arg2: memref<8x512xf32, #tpu.memory_space<vmem>>) attributes {dimension_semantics = [#tpu.dimension_semantics<parallel>], iteration_bounds = array<i64: 1>, scalar_prefetch = 0 : i64, scratch_operands = 0 : i64, tpu.core_type = #tpu.core_type<tc>, window_params = [{transform_indices = @transform_0, window_bounds = array<i64: 2, 8, 512>}, {transform_indices = @transform_1, window_bounds = array<i64: 8, 512>}]} {
    %c0 = arith.constant 0 : index
    %c0_0 = arith.constant 0 : index
    %c0_1 = arith.constant 0 : index
    %0 = vector.load %arg1[%c0, %c0_0, %c0_1] : memref<2x8x512xf32, #tpu.memory_space<vmem>>, vector<1x8x512xf32>
    %1 = vector.shape_cast %0 : vector<1x8x512xf32> to vector<8x512xf32>
    %c1 = arith.constant 1 : index
    %c0_2 = arith.constant 0 : index
    %c0_3 = arith.constant 0 : index
    %2 = vector.load %arg1[%c1, %c0_2, %c0_3] : memref<2x8x512xf32, #tpu.memory_space<vmem>>, vector<1x8x512xf32>
    %3 = vector.shape_cast %2 : vector<1x8x512xf32> to vector<8x512xf32>
    %4 = arith.mulf %1, %1 : vector<8x512xf32>
    %5 = arith.mulf %3, %3 : vector<8x512xf32>
    %6 = arith.addf %4, %5 : vector<8x512xf32>
    %cst = arith.constant 1.000000e+00 : f32
    %7 = vector.broadcast %cst : f32 to vector<8x512xf32>
    %8 = arith.subf %6, %7 : vector<8x512xf32>
    %c0_4 = arith.constant 0 : index
    %c0_5 = arith.constant 0 : index
    %9 = vector.load %arg2[%c0_4, %c0_5] : memref<8x512xf32, #tpu.memory_space<vmem>>, vector<8x512xf32>
    tpu.vector_store %arg2[%c0_4, %c0_5], %8 {strides = array<i32>} : memref<8x512xf32, #tpu.memory_space<vmem>>, vector<8x512xf32>,
    return
  }
  func.func @transform_0(%arg0: i32) -> (i32, i32, i32) {
    %c0_i32 = arith.constant 0 : i32
    %c0_i32_0 = arith.constant 0 : i32
    %c0_i32_1 = arith.constant 0 : i32
    return %c0_i32, %arg0, %c0_i32_0 : i32, i32, i32
  }
  func.func @transform_1(%arg0: i32) -> (i32, i32) {
    %c0_i32 = arith.constant 0 : i32
    %c0_i32_0 = arith.constant 0 : i32
    return %arg0, %c0_i32 : i32, i32
  }
}

</mosaic_0001>

<bundles_post_ra>
// kernel: cbf_forward.1
= control target key start
LH: loop header
LB: loop body
LE: loop exit
PB: predicated region body
PF: predicated region fallthrough
CT: control target
= control target key end

     0   :  { %s95_s0 = inlined_call_operand.vmem [shape: f32[2,8,512], index: 0, kind: input, shape index: {}]   ;;  %s96_s1 = inlined_call_operand.vmem [shape: f32[8,512], index: 1, kind: output, shape index: {}]  }
   0x1   :  { %v8_v0 = vld [vmem:[%s95_s0] sm:$0xff]  ;;  %v9_v2 = vld [vmem:[%s95_s0 + $0x8] sm:$0xff]  ;;  %v10_v7 = vld [vmem:[%s95_s0 + $0x10] sm:$0xff] }
   0x2   :  { %v41_v1 = vld [vmem:[%s95_s0 + $0x20] sm:$0xff]  ;;  %v17_v3 = vmul.f32 %v8_v0, %v8_v0  ;;  %v42_v5 = vld [vmem:[%s95_s0 + $0x28] sm:$0xff]  ;;  %v18_v6 = vmul.f32 %v9_v2, %v9_v2  ;;  %v43_v8 = vld [vmem:[%s95_s0 + $0x30] sm:$0xff]  ;;  %v19_v10 = vmul.f32 %v10_v7, %v10_v7 }
   0x3   :  { %v21_v4 = vmul.f32 %v41_v1, %v41_v1  ;;  %v22_v9 = vmul.f32 %v42_v5, %v42_v5  ;;  %v23_v11 = vmul.f32 %v43_v8, %v43_v8  ;;  %v11_v12 = vld [vmem:[%s95_s0 + $0x18] sm:$0xff] }
   0x4   :  { %v44_v13 = vld [vmem:[%s95_s0 + $0x38] sm:$0xff]  ;;  %v20_v15 = vmul.f32 %v11_v12, %v11_v12 }
   0x5   :  { %v25_v14 = vadd.f32 %v21_v4, %v17_v3  ;;  %v24_v16 = vmul.f32 %v44_v13, %v44_v13  ;;  %v26_v17 = vadd.f32 %v22_v9, %v18_v6  ;;  %v27_v18 = vadd.f32 %v23_v11, %v19_v10 }
   0x7   :  { %v45_v19 = vadd.f32 -1.0, %v25_v14  ;;  %v28_v20 = vadd.f32 %v24_v16, %v20_v15  ;;  %v46_v21 = vadd.f32 -1.0, %v26_v17  ;;  %v47_v22 = vadd.f32 -1.0, %v27_v18 }
   0x9   :  { %33 = vst [vmem:[%s96_s1] sm:$0xff] %v45_v19  ;;  %v48_v23 = vadd.f32 -1.0, %v28_v20  ;;  %34 = vst [vmem:[%s96_s1 + $0x8] sm:$0xff] %v46_v21 }
   0xa   :  { %35 = vst [vmem:[%s96_s1 + $0x10] sm:$0xff] %v47_v22 }
   0xb   :  { %36 = vst [vmem:[%s96_s1 + $0x18] sm:$0xff] %v48_v23 }

</bundles_post_ra>
